<compile_context>
chip_gen: v7x
topology: tpu7x:2x2x1
jax: 0.10.0
libtpu: 0.0.40
codegen_flags: <defaults>
</compile_context>

<pallas_src>
import jax
import jax.numpy as jnp
from jax.experimental import pallas as pl
from jax.experimental.pallas import tpu as pltpu


# ---------------------------------------------------------------------------
# Pallas kernel: fused localization head (one hidden-dim slice per grid-j).
#     theta_partial[j] = relu(x @ w1[:, j-slice] + b1[j-slice]) @ w2[j-slice, :]
# Grid = (num_splits, K_blocks); K is the reduction axis (accumulated in f32).
# ---------------------------------------------------------------------------
def _loc_head_kernel(x_ref, w1_ref, b1_ref, w2_ref, theta_ref, acc_ref):
    k = pl.program_id(1)

    @pl.when(k == 0)
    def _():
        # Init accumulator with the broadcast bias (drops the epilogue add).
        acc_ref[...] = jnp.broadcast_to(b1_ref[...], acc_ref.shape)

    # (n, tk) bf16 @ (tk, th) bf16 -> f32 accumulation on the MXU.
    acc_ref[...] += jnp.dot(x_ref[...], w1_ref[...],
                            preferred_element_type=jnp.float32)

    @pl.when(k == pl.num_programs(1) - 1)
    def _():
        h = jnp.maximum(acc_ref[...], 0.0)                       # Dense + ReLU
        theta = jnp.dot(h, w2_ref[...],                          # Linear slice
                        preferred_element_type=jnp.float32)
        theta_ref[...] = theta[None].astype(theta_ref.dtype)


def prepare_loc_head_params(w1, b1, w2, b2, *, num_splits=2,
                            stream_dtype=jnp.bfloat16):
    """One-time repack of the head params (call OUTSIDE the jitted forward).

    w1 (F, H) -> (S, F, H/S) in bf16 so each TensorCore streams a disjoint
    column slice; b1/w2 are split the same way (tiny, kept f32).
    """
    f, hidden = w1.shape
    out_dim = w2.shape[1]
    assert hidden % num_splits == 0
    th = hidden // num_splits
    w1s = jnp.transpose(jnp.reshape(w1, (f, num_splits, th)),
                        (1, 0, 2)).astype(stream_dtype)          # (S, F, th)
    b1s = jnp.reshape(b1, (num_splits, 1, th)).astype(jnp.float32)
    w2s = jnp.reshape(w2, (num_splits, th, out_dim)).astype(jnp.float32)
    b2 = jnp.reshape(b2, (1, out_dim)).astype(jnp.float32)
    return {"w1s": w1s, "b1s": b1s, "w2s": w2s, "b2": b2}


def loc_head(x_flat, loc, *, block_k=32768):
    """theta = relu(x_flat @ w1 + b1) @ w2 + b2, fused in Pallas."""
    n, f = x_flat.shape
    w1s, b1s, w2s, b2 = loc["w1s"], loc["b1s"], loc["w2s"], loc["b2"]
    num_splits, f_w, th = w1s.shape
    assert f_w == f, (f_w, f)
    out_dim = w2s.shape[-1]

    # Largest lane-aligned (x128) K tile <= block_k that divides F exactly:
    # no per-call padding of w1 or x_flat (per perf review).
    tk = None
    for cand in range(min(block_k, f) // 128 * 128, 0, -128):
        if f % cand == 0:
            tk = cand
            break
    if tk is None:
        # TODO(synk): F not a multiple of 128 -- fall back to a single
        # full-extent (unaligned) K block; the spec's F=320000 never hits this.
        tk = f
    grid_k = f // tk

    x_stream = x_flat.astype(w1s.dtype)

    partials = pl.pallas_call(
        _loc_head_kernel,
        out_shape=jax.ShapeDtypeStruct((num_splits, n, out_dim), jnp.float32),
        grid_spec=pltpu.PrefetchScalarGridSpec(
            num_scalar_prefetch=0,
            grid=(num_splits, grid_k),                 # (hidden-split, K-reduce)
            in_specs=[
                pl.BlockSpec((n, tk), lambda j, k: (0, k)),              # x
                pl.BlockSpec((None, tk, th), lambda j, k: (j, k, 0)),    # w1 slice
                pl.BlockSpec((None, 1, th), lambda j, k: (j, 0, 0)),     # b1 slice
                pl.BlockSpec((None, th, out_dim), lambda j, k: (j, 0, 0)),  # w2 slice
            ],
            out_specs=pl.BlockSpec((1, n, out_dim), lambda j, k: (j, 0, 0)),
            scratch_shapes=[pltpu.VMEM((n, th), jnp.float32)],
        ),
        compiler_params=pltpu.CompilerParams(
            dimension_semantics=("parallel", "arbitrary"),   # split TCs / reduce K
            vmem_limit_bytes=32 * 1024 * 1024,               # safe on v5e/v6e/v7x
        ),
    )(x_stream, w1s, b1s, w2s)

    theta = jnp.sum(partials, axis=0) + b2      # combine the tiny (n,6) partials
    return theta.astype(x_flat.dtype)


# ---------------------------------------------------------------------------
# Remaining STN pieces (plain JAX).
# ---------------------------------------------------------------------------
def conv2d_relu(x, w, b, stride):
    # TODO(synk): strided 3x3 conv is left to XLA's MXU conv; no Pallas conv here.
    y = jax.lax.conv_general_dilated(
        x, w, window_strides=(stride, stride), padding=((1, 1), (1, 1)),
        dimension_numbers=("NCHW", "OIHW", "NCHW"))
    y = y + b[None, :, None, None]
    return jnp.maximum(y, 0.0)


def affine_grid(theta, size):
    # F.affine_grid(theta, size, align_corners=False)
    n, _, h, w = size
    xs = (2.0 * jnp.arange(w, dtype=jnp.float32) + 1.0) / w - 1.0
    ys = (2.0 * jnp.arange(h, dtype=jnp.float32) + 1.0) / h - 1.0
    base = jnp.stack(
        [jnp.broadcast_to(xs[None, :], (h, w)),
         jnp.broadcast_to(ys[:, None], (h, w)),
         jnp.ones((h, w), jnp.float32)], axis=-1)           # (H, W, 3)
    return jnp.einsum("hwj,nkj->nhwk", base, theta)         # (N, H, W, 2)


def grid_sample_bilinear(img, grid):
    # F.grid_sample(img, grid, mode='bilinear', padding_mode='zeros',
    #               align_corners=False)
    # TODO(synk): the data-dependent bilinear gather is left to XLA; there is no
    # clean Pallas per-pixel gather primitive for this access pattern.
    n, c, h, w = img.shape
    img_nhwc = jnp.transpose(img, (0, 2, 3, 1))
    ix = ((grid[..., 0] + 1.0) * w - 1.0) * 0.5
    iy = ((grid[..., 1] + 1.0) * h - 1.0) * 0.5
    x0 = jnp.floor(ix)
    y0 = jnp.floor(iy)
    wx1 = ix - x0
    wy1 = iy - y0
    bidx = jnp.arange(n)[:, None, None]

    def tap(yi, xi, wgt):
        valid = (xi >= 0) & (xi <= w - 1) & (yi >= 0) & (yi <= h - 1)
        xc = jnp.clip(xi, 0, w - 1).astype(jnp.int32)
        yc = jnp.clip(yi, 0, h - 1).astype(jnp.int32)
        v = img_nhwc[bidx, yc, xc]                          # (N, Ho, Wo, C)
        return v * (wgt * valid.astype(img.dtype))[..., None]

    out = (tap(y0, x0, (1.0 - wy1) * (1.0 - wx1))
           + tap(y0, x0 + 1.0, (1.0 - wy1) * wx1)
           + tap(y0 + 1.0, x0, wy1 * (1.0 - wx1))
           + tap(y0 + 1.0, x0 + 1.0, wy1 * wx1))
    return jnp.transpose(out, (0, 3, 1, 2))                 # (N, C, Ho, Wo)


def stn_forward(image, params):
    x = conv2d_relu(image, params["w_c1"], params["b_c1"], 2)
    x = conv2d_relu(x, params["w_c2"], params["b_c2"], 2)
    x = conv2d_relu(x, params["w_c3"], params["b_c3"], 2)
    # Flatten == torch .view(N, -1): metadata reshape feeding the Pallas head
    # as a lane-dense 2D array.  (Assumes XLA keeps NCHW-major layout here; if
    # it picks an NHWC-favoring layout this becomes a small transpose copy.)
    x_flat = jnp.reshape(x, (x.shape[0], -1))
    theta = loc_head(x_flat, params["loc"])
    theta = theta.reshape(-1, 2, 3)
    grid = affine_grid(theta, image.shape)
    return grid_sample_bilinear(image, grid)


if __name__ == "__main__":
    key = jax.random.PRNGKey(0)
    ks = jax.random.split(key, 8)

    # Small STN-consistent shapes: image (2, 3, 32, 32); three stride-2 convs
    # -> (2, 128, 4, 4) -> flatten F = 2048 -> Dense(2048,128) -> Linear(128,6).
    n, c, hw = 2, 3, 32
    image = jax.random.normal(ks[0], (n, c, hw, hw), dtype=jnp.float32)

    def he(k, shape, fan_in):
        return jax.random.normal(k, shape, jnp.float32) * jnp.sqrt(2.0 / fan_in)

    f_in = 128 * (hw // 8) * (hw // 8)
    hidden = 128
    w1_f32 = he(ks[4], (f_in, hidden), f_in)
    b1_f32 = jnp.zeros((hidden,), jnp.float32)
    # Final linear: weight = 0, bias = identity transform (as in the spec).
    w2_spec = jnp.zeros((hidden, 6), jnp.float32)
    b2_spec = jnp.array([1.0, 0.0, 0.0, 0.0, 1.0, 0.0], jnp.float32)

    params = {
        "w_c1": he(ks[1], (32, 3, 3, 3), 3 * 9),
        "b_c1": jnp.zeros((32,), jnp.float32),
        "w_c2": he(ks[2], (64, 32, 3, 3), 32 * 9),
        "b_c2": jnp.zeros((64,), jnp.float32),
        "w_c3": he(ks[3], (128, 64, 3, 3), 64 * 9),
        "b_c3": jnp.zeros((128,), jnp.float32),
        # One-time repack (bf16 w1, hidden split) OUTSIDE the jitted forward.
        "loc": prepare_loc_head_params(w1_f32, b1_f32, w2_spec, b2_spec),
    }

    # --- Check 1: Pallas head vs. an f32 jnp reference with non-trivial
    #     weights (tolerance accounts for the bf16 w1/x stream; acc is f32). ---
    x_flat_test = jax.random.normal(ks[5], (n, f_in), jnp.float32)
    w2_test = jax.random.normal(ks[6], (hidden, 6), jnp.float32) * 0.1
    b2_test = jax.random.normal(ks[7], (6,), jnp.float32)
    loc_test = prepare_loc_head_params(w1_f32, b1_f32, w2_test, b2_test)
    got = loc_head(x_flat_test, loc_test)
    jax.block_until_ready(got)
    h_ref = jnp.maximum(
        jnp.dot(x_flat_test, w1_f32,
                precision=jax.lax.Precision.HIGHEST) + b1_f32[None, :], 0.0)
    ref = jnp.dot(h_ref, w2_test,
                  precision=jax.lax.Precision.HIGHEST) + b2_test[None, :]
    assert got.shape == (n, 6)
    assert jnp.allclose(got, ref, rtol=3e-2, atol=3e-2)

    # --- Check 2: full STN forward with spec init (zero final weight, identity
    #     bias) must reproduce the input image (identity spatial transform). ---
    out = jax.jit(stn_forward)(image, params)
    jax.block_until_ready(out)
    assert out.shape == image.shape
    assert out.dtype == image.dtype
    assert jnp.allclose(out, image, atol=1e-5)

    print("KERNEL_OK")
</pallas_src>

<mosaic_0001>
module attributes {stable_mosaic.version = 11 : i64} {
  func.func @_loc_head_kernel(%arg0: i32, %arg1: i32, %arg2: memref<2x2048xbf16, #tpu.memory_space<vmem>>, %arg3: memref<1x2048x64xbf16, #tpu.memory_space<vmem>>, %arg4: memref<1x1x64xf32, #tpu.memory_space<vmem>>, %arg5: memref<1x64x6xf32, #tpu.memory_space<vmem>>, %arg6: memref<1x2x6xf32, #tpu.memory_space<vmem>>, %arg7: memref<2x64xf32, #tpu.memory_space<vmem>>) attributes {dimension_semantics = [#tpu.dimension_semantics<parallel>, #tpu.dimension_semantics<arbitrary>], iteration_bounds = array<i64: 2, 1>, scalar_prefetch = 0 : i64, scratch_operands = 1 : i64, tpu.core_type = #tpu.core_type<tc>, window_params = [{transform_indices = @transform_0, window_bounds = array<i64: 2, 2048>}, {transform_indices = @transform_1, window_bounds = array<i64: 1, 2048, 64>}, {transform_indices = @transform_2, window_bounds = array<i64: 1, 1, 64>}, {transform_indices = @transform_3, window_bounds = array<i64: 1, 64, 6>}, {transform_indices = @transform_4, window_bounds = array<i64: 1, 2, 6>}]} {
    %c0_i32 = arith.constant 0 : i32
    %0 = arith.cmpi eq, %arg1, %c0_i32 : i32
    %1 = arith.extui %0 : i1 to i32
    %c0_i32_0 = arith.constant 0 : i32
    %2 = arith.cmpi ne, %1, %c0_i32_0 : i32
    scf.if %2 {
      %c0_11 = arith.constant 0 : index
      %c0_12 = arith.constant 0 : index
      %c0_13 = arith.constant 0 : index
      %13 = vector.load %arg4[%c0_11, %c0_12, %c0_13] : memref<1x1x64xf32, #tpu.memory_space<vmem>>, vector<1x1x64xf32>
      %14 = vector.shape_cast %13 : vector<1x1x64xf32> to vector<1x64xf32>
      %15 = vector.shape_cast %14 : vector<1x64xf32> to vector<1x64xf32>
      %16 = vector.broadcast %15 : vector<1x64xf32> to vector<2x64xf32>
      %c0_14 = arith.constant 0 : index
      %c0_15 = arith.constant 0 : index
      %17 = vector.load %arg7[%c0_14, %c0_15] : memref<2x64xf32, #tpu.memory_space<vmem>>, vector<2x64xf32>
      tpu.vector_store %arg7[%c0_14, %c0_15], %16 {strides = array<i32>} : memref<2x64xf32, #tpu.memory_space<vmem>>, vector<2x64xf32>,
    } else {
    }
    %c0 = arith.constant 0 : index
    %c0_1 = arith.constant 0 : index
    %3 = vector.load %arg7[%c0, %c0_1] : memref<2x64xf32, #tpu.memory_space<vmem>>, vector<2x64xf32>
    %c0_2 = arith.constant 0 : index
    %c0_3 = arith.constant 0 : index
    %4 = vector.load %arg2[%c0_2, %c0_3] : memref<2x2048xbf16, #tpu.memory_space<vmem>>, vector<2x2048xbf16>
    %c0_4 = arith.constant 0 : index
    %c0_5 = arith.constant 0 : index
    %c0_6 = arith.constant 0 : index
    %5 = vector.load %arg3[%c0_4, %c0_5, %c0_6] : memref<1x2048x64xbf16, #tpu.memory_space<vmem>>, vector<1x2048x64xbf16>
    %6 = vector.shape_cast %5 : vector<1x2048x64xbf16> to vector<2048x64xbf16>
    %cst = arith.constant dense<0.000000e+00> : vector<2x64xf32>
    %7 = tpu.matmul %4, %6, %cst {dimension_numbers = #tpu.dot_dimension_numbers<[1], [0], [0], [1], [0, 0, 1, 1], [], []>} : vector<2x2048xbf16>, vector<2048x64xbf16>, vector<2x64xf32> -> vector<2x64xf32>
    %8 = arith.addf %3, %7 : vector<2x64xf32>
    %c0_7 = arith.constant 0 : index
    %c0_8 = arith.constant 0 : index
    %9 = vector.load %arg7[%c0_7, %c0_8] : memref<2x64xf32, #tpu.memory_space<vmem>>, vector<2x64xf32>
    tpu.vector_store %arg7[%c0_7, %c0_8], %8 {strides = array<i32>} : memref<2x64xf32, #tpu.memory_space<vmem>>, vector<2x64xf32>,
    %c0_i32_9 = arith.constant 0 : i32
    %10 = arith.cmpi eq, %arg1, %c0_i32_9 : i32
    %11 = arith.extui %10 : i1 to i32
    %c0_i32_10 = arith.constant 0 : i32
    %12 = arith.cmpi ne, %11, %c0_i32_10 : i32
    scf.if %12 {
      %c0_11 = arith.constant 0 : index
      %c0_12 = arith.constant 0 : index
      %13 = vector.load %arg7[%c0_11, %c0_12] : memref<2x64xf32, #tpu.memory_space<vmem>>, vector<2x64xf32>
      %cst_13 = arith.constant 0.000000e+00 : f32
      %14 = vector.broadcast %cst_13 : f32 to vector<2x64xf32>
      %15 = arith.maximumf %13, %14 : vector<2x64xf32>
      %c0_14 = arith.constant 0 : index
      %c0_15 = arith.constant 0 : index
      %c0_16 = arith.constant 0 : index
      %16 = vector.load %arg5[%c0_14, %c0_15, %c0_16] : memref<1x64x6xf32, #tpu.memory_space<vmem>>, vector<1x64x6xf32>
      %17 = vector.shape_cast %16 : vector<1x64x6xf32> to vector<64x6xf32>
      %cst_17 = arith.constant dense<0.000000e+00> : vector<2x6xf32>
      %18 = tpu.matmul %15, %17, %cst_17 {dimension_numbers = #tpu.dot_dimension_numbers<[1], [0], [0], [1], [0, 0, 1, 1], [], []>} : vector<2x64xf32>, vector<64x6xf32>, vector<2x6xf32> -> vector<2x6xf32>
      %19 = vector.shape_cast %18 : vector<2x6xf32> to vector<1x2x6xf32>
      %c0_18 = arith.constant 0 : index
      %c0_19 = arith.constant 0 : index
      %c0_20 = arith.constant 0 : index
      %20 = vector.load %arg6[%c0_18, %c0_19, %c0_20] : memref<1x2x6xf32, #tpu.memory_space<vmem>>, vector<1x2x6xf32>
      tpu.vector_store %arg6[%c0_18, %c0_19, %c0_20], %19 {strides = array<i32>} : memref<1x2x6xf32, #tpu.memory_space<vmem>>, vector<1x2x6xf32>,
    } else {
    }
    return
  }
  func.func @transform_0(%arg0: i32, %arg1: i32) -> (i32, i32) {
    %c0_i32 = arith.constant 0 : i32
    %c0_i32_0 = arith.constant 0 : i32
    return %c0_i32, %arg1 : i32, i32
  }
  func.func @transform_1(%arg0: i32, %arg1: i32) -> (i32, i32, i32) {
    %c0_i32 = arith.constant 0 : i32
    %c0_i32_0 = arith.constant 0 : i32
    return %arg0, %arg1, %c0_i32 : i32, i32, i32
  }
  func.func @transform_2(%arg0: i32, %arg1: i32) -> (i32, i32, i32) {
    %c0_i32 = arith.constant 0 : i32
    %c0_i32_0 = arith.constant 0 : i32
    %c0_i32_1 = arith.constant 0 : i32
    return %arg0, %c0_i32, %c0_i32_0 : i32, i32, i32
  }
  func.func @transform_3(%arg0: i32, %arg1: i32) -> (i32, i32, i32) {
    %c0_i32 = arith.constant 0 : i32
    %c0_i32_0 = arith.constant 0 : i32
    %c0_i32_1 = arith.constant 0 : i32
    return %arg0, %c0_i32, %c0_i32_0 : i32, i32, i32
  }
  func.func @transform_4(%arg0: i32, %arg1: i32) -> (i32, i32, i32) {
    %c0_i32 = arith.constant 0 : i32
    %c0_i32_0 = arith.constant 0 : i32
    %c0_i32_1 = arith.constant 0 : i32
    return %arg0, %c0_i32, %c0_i32_0 : i32, i32, i32
  }
}

</mosaic_0001>

<bundles_post_ra>
// kernel: tpu_custom_call.1
= control target key start
LH: loop header
LB: loop body
LE: loop exit
PB: predicated region body
PF: predicated region fallthrough
CT: control target
= control target key end

     0   :  { %9 = vsyncpa [#allocation4], 0  ;;  %s2928_s0 = inlined_call_operand.vmem [shape: bf16[2,2048], index: 0, kind: input, shape index: {}]   ;;  %s2929_s1 = inlined_call_operand.vmem [shape: bf16[2,2048,64], index: 1, kind: input, shape index: {}]   ;;  %s2930_s2 = inlined_call_operand.vmem [shape: f32[2,1,64], index: 2, kind: input, shape index: {}]   ;;  %s2931_s3 = inlined_call_operand.vmem [shape: f32[2,64,6], index: 3, kind: input, shape index: {}]   ;;  %s2932_s4 = inlined_call_operand.hbm [shape: f32[2,2,6], index: 4, kind: output, shape index: {}]  }
   0x1   :  { %11 = vsyncpa [#allocation4 + $0x1], 0  ;;  %s2628_s15 = smov 0   ;;  %s2630_s16 = smov 0  }
   0x2   :  { %s2632_s17 = smov 0   ;;  %s2634_s18 = smov 0  }
   0x3   :  { %s2636_s19 = smov 0   ;;  %s2638_s20 = smov 0  }
   0x4 LB: > { %s1966_s21 = sadd.s32 4294967295, %s2596_s20   ;;  %s1967_s22 = sadd.s32 4294967294, %s2596_s20   ;;  %s2596_s20 = sphi %s2638_s20, %s17_s20   ;;  %s2592_s19 = sphi %s2636_s19, %s2939_s19   ;;  %s2588_s18 = sphi %s2634_s18, %s2938_s18   ;;  %s2584_s17 = sphi %s2632_s17, %s2937_s17   ;;  %s2580_s16 = sphi %s2630_s16, %s2936_s16   ;;  %s2576_s15 = sphi %s2628_s15, %s2935_s15  }
   0x5   : > { %s29_s23 = sadd.s32 1, %s2592_s19  ;;  %s142_s24 = sadd.s32 1, %s2584_s17 }
   0x6   : > { %p31_p0 = scmp.ge.s32.totalorder %s29_s23, 2  ;;  %p152_p1 = scmp.ne.s32.totalorder %s2584_s17, %s2580_s16 }
   0x7   : > { %p153_p2 = scmp.eq.s32.totalorder %s1966_s21, 1  ;;  %p158_p3 = scmp.ne.s32.totalorder %s2580_s16, %s2576_s15 }
   0x8   : > { %s2941_s23 = smov (%p31_p0, %s29_s23), 0  ;;  %p159_p5 = scmp.eq.s32.totalorder %s1967_s22, 1 }
   0x9   : > { %p2668_p4 = por %p153_p2, %p152_p1  ;;  %s139_s26 = ssub.s32 %s2592_s19, %s2941_s23 }
   0xa   : > { %p1971_p6 = scmp.ge.s32.totalorder %s2596_s20, 1  ;;  %p140_p7 = scmp.eq.s32.totalorder %s139_s26, 0 }
   0xb   : > { %p2675_p8 = por %p159_p5, %p158_p3  ;;  %p212_p9 = scmp.lt.s32.totalorder %s2596_s20, 3 }
   0xc   : > { %s2681_s28 = scalar_select %p140_p7, %s2584_s17, %s142_s24  }
   0xd   : > { %p213_p10 = pnand %p1971_p6, %p212_p9 }
   0xe   : > { %p260_p11 = scmp.lt.s32.totalorder (!%p213_p10), %s2588_s18, 1  ;;  %v556_v0 = vlaneseq (!%p213_p10)  ;;  %v2598_v1 = vmov (!%p213_p10), 1966171168   ;;  %v292_v5 = vld [vmem:[%s2928_s0] sm:$0xff] (!%p213_p10)  ;;  %vm289_vm0 = vcmask (!%p213_p10), 517120   ;;  %vm2600_vm1 = vmmov (!%p213_p10), 0  }
   0xf   : > { %216 = sbr.rel (%p213_p10) target bundleno = 613 (0x265), region = 36  ;;  %v554_v2 = vunpack.c.l.s4 (!%p213_p10), %v2598_v1  ;;  %v552_v30 = vcombine.high (!%p213_p10), %v292_v5, %v292_v5  ;;  %vm1770_vm2 = vcmask (!%p213_p10), 523264   ;;  %s2108_s5 = sshll.u32 (!%p213_p10), %s2588_s18, 5  ;;  %vm1844_vm3 = vcmask (!%p213_p10), 41984  }
  0x10   : > { %v557_v3 = vshrl.u32 (!%p213_p10), %v556_v0, 7  ;;  %s2881_s10 = scalar_lea.hbm (!%p213_p10), %s2932_s4, %s2108_s5 }
  0x11   : > { %v555_v4 = vunpack.c.0.s8 (!%p213_p10), %v554_v2 }
  0x13   : > { %v2696_v6 = vsub.s32 (!%p213_p10), %v555_v4, %v557_v3  ;;  %v2765_v4 = vld [vmem:[%s2928_s0 + $0x8] sm:$0xff] (!%p213_p10) }
  0x15   : > { %v2701_v9 = vrot.slane (!%p213_p10), %v292_v5, %v2696_v6  ;;  %v2728_v35 = vrot.slane (!%p213_p10), %v552_v30, %v2696_v6 }
  0x16   : > { %s2685_s29 = scalar_select %p260_p11, %s2588_s18, 1 }
  0x17   : > { %v567_v12 = vcombine.high %v2701_v9, %v2701_v9  ;;  %v568_v40 = vcombine.high %v2728_v35, %v2728_v35  ;;  %v575_v43 = vrot.slane %v2701_v9, %v2696_v6  ;;  %s2602_s18 = smov [#allocation3]  }
  0x18   : > { %s2111_s30 = sshll.u32 %s2685_s29, 10  ;;  %s271_s14 = scalar_lea.vmem %s2930_s2, %s2685_s29 }
  0x19   : > { %s2694_s9 = scalar_lea.vmem %s2929_s1, %s2111_s30  ;;  %v589_v15 = vrot.slane %v567_v12, %v2696_v6  ;;  %v596_v46 = vrot.slane %v568_v40, %v2696_v6  ;;  %v597_v48 = vcombine.high %v575_v43, %v575_v43  ;;  %s2112_s21 = sshll.u32 %s2685_s29, 6 }
  0x1a   : > { %v2388_v7 = vld [vmem:[%s2694_s9 + $0x40] sm:$0xff]   ;;  %v2392_v13 = vld [vmem:[%s2694_s9 + $0x48] sm:$0xff]   ;;  %v2396_v19 = vld [vmem:[%s2694_s9 + $0x50] sm:$0xff]   ;;  %s276_s26 = scalar_lea.vmem %s2931_s3, %s2112_s21  ;;  %s251_s29 = sand.u32 1, %s2580_s16  }
  0x1b   : > { %v2389_v8 = vld [vmem:[%s2694_s9 + $0xc0] sm:$0xff]   ;;  %2113 = vmatprep.subr.bf16.mxu0 %v2388_v7  ;;  %v2393_v14 = vld [vmem:[%s2694_s9 + $0xc8] sm:$0xff]   ;;  %1466 = vmatprep.mubr.bf16.mxu0 %v589_v15  ;;  %v599_v18 = vcombine.high %v589_v15, %v589_v15  ;;  %v2397_v20 = vld [vmem:[%s2694_s9 + $0xd0] sm:$0xff]   ;;  %v600_v52 = vcombine.high %v596_v46, %v596_v46  ;;  %s1972_s30 = sshll.u32 %s251_s29, 1  ;;  %s1847_s11 = scalar_lea.sflag [#allocation4], %s251_s29 }
  0x1c   : > { %v2390_v10 = vld [vmem:[%s2694_s9] sm:$0xff]   ;;  %2135 = vmatprep.subr.bf16.mxu1 %v2389_v8  ;;  %v2394_v16 = vld [vmem:[%s2694_s9 + $0x8] sm:$0xff]   ;;  %v2398_v21 = vld [vmem:[%s2694_s9 + $0x10] sm:$0xff]   ;;  %s253_s6 = scalar_lea.vmem [#allocation3], %s1972_s30  ;;  %s2522_s13 = sshll.u32 %s2602_s18, 4  ;;  %s2523_s13 = int_to_ptr.vmem [resolvable:$false] %s2522_s13 }
  0x1d   : > { %v2391_v11 = vld [vmem:[%s2694_s9 + $0x80] sm:$0xff]   ;;  %2114 = vmatpush3.bf16.msra.mxu0 %v2390_v10  ;;  %v2395_v17 = vld [vmem:[%s2694_s9 + $0x88] sm:$0xff]   ;;  %1506 = vmatprep.mubr.bf16.mxu1 %v599_v18  ;;  %v2399_v22 = vld [vmem:[%s2694_s9 + $0x90] sm:$0xff]   ;;  %s1860_s7 = sshll.u32 %s253_s6, 4  ;;  %s2883_s7 = int_to_ptr.vmem [resolvable:$true] %s1860_s7 }
  0x1e   : > { %2136 = vmatpush3.bf16.msra.mxu1 %v2391_v11  ;;  %2115 = vmatprep.subr.bf16.mxu0 %v2392_v13  ;;  %v2400_v23 = vld [vmem:[%s2694_s9 + $0x58] sm:$0xff]   ;;  %v2404_v27 = vld [vmem:[%s2694_s9 + $0x60] sm:$0xff]   ;;  %v2408_v32 = vld [vmem:[%s2694_s9 + $0x68] sm:$0xff]   ;;  %v2774_v11 = vrot.slane %v2765_v4, %v2696_v6  ;;  %s2518_s12 = scalar_lea.vmem %s2883_s7, 32  ;;  %p2525_p1 = scmp.lt.s32.totalorder %s2883_s7, %s2523_s13 }
  0x1f   : > { %2137 = vmatprep.subr.bf16.mxu1 %v2393_v14  ;;  %v2401_v24 = vld [vmem:[%s2694_s9 + $0xd8] sm:$0xff]   ;;  %v2405_v28 = vld [vmem:[%s2694_s9 + $0xe0] sm:$0xff]   ;;  %v2409_v33 = vld [vmem:[%s2694_s9 + $0xe8] sm:$0xff]   ;;  %p2519_p12 = scmp.ne.s32.totalorder %s2883_s7, %s2518_s12 }
  0x20   : > { %v2402_v25 = vld [vmem:[%s2694_s9 + $0x18] sm:$0xff]   ;;  %v2406_v29 = vld [vmem:[%s2694_s9 + $0x20] sm:$0xff]   ;;  %v2410_v34 = vld [vmem:[%s2694_s9 + $0x28] sm:$0xff]  }
  0x21   : > { %2116 = vmatpush3.bf16.msra.mxu0 %v2394_v16  ;;  %v2403_v26 = vld [vmem:[%s2694_s9 + $0x98] sm:$0xff]   ;;  %v2407_v31 = vld [vmem:[%s2694_s9 + $0xa0] sm:$0xff]   ;;  %v2411_v36 = vld [vmem:[%s2694_s9 + $0xa8] sm:$0xff]   ;;  %v616_v16 = vcombine.high %v2774_v11, %v2774_v11  ;;  %p2520_p13 = pnand %p2519_p12, %p2668_p4 }
  0x22   : > { %2138 = vmatpush3.bf16.msra.mxu1 %v2395_v17  ;;  %2117 = vmatprep.subr.bf16.mxu0 %v2396_v19  ;;  %v2412_v37 = vld [vmem:[%s2694_s9 + $0x70] sm:$0xff]   ;;  %v2416_v42 = vld [vmem:[%s2694_s9 + $0x78] sm:$0xff]   ;;  %v2421_v49 = vld [vmem:[%s2694_s9 + $0x140] sm:$0xff]   ;;  %v582_v19 = vrot.slane %v2728_v35, %v2696_v6 }
  0x23   : > { %2139 = vmatprep.subr.bf16.mxu1 %v2397_v20  ;;  %v2413_v38 = vld [vmem:[%s2694_s9 + $0xf0] sm:$0xff]   ;;  %v2417_v44 = vld [vmem:[%s2694_s9 + $0xf8] sm:$0xff]   ;;  %v2422_v50 = vld [vmem:[%s2694_s9 + $0x1c0] sm:$0xff]   ;;  %p2521_p0 = pneg %p2520_p13 }
  0x24   : > { %v2414_v39 = vld [vmem:[%s2694_s9 + $0x30] sm:$0xff]   ;;  %v2418_v45 = vld [vmem:[%s2694_s9 + $0x38] sm:$0xff]   ;;  %v2423_v51 = vld [vmem:[%s2694_s9 + $0x100] sm:$0xff]  }
  0x25   : > { %2118 = vmatpush3.bf16.msra.mxu0 %v2398_v21  ;;  %v2415_v41 = vld [vmem:[%s2694_s9 + $0xb0] sm:$0xff]   ;;  %v2419_v47 = vld [vmem:[%s2694_s9 + $0xb8] sm:$0xff]   ;;  %v2424_v53 = vld [vmem:[%s2694_s9 + $0x180] sm:$0xff]  }
  0x26   : > { %2140 = vmatpush3.bf16.msra.mxu1 %v2399_v22  ;;  %2119 = vmatprep.subr.bf16.mxu0 %v2400_v23  ;;  %v2425_v54 = vld [vmem:[%s2694_s9 + $0x148] sm:$0xff]   ;;  %v2429_v58 = vld [vmem:[%s2694_s9 + $0x150] sm:$0xff]   ;;  %v2433_v62 = vld [vmem:[%s2694_s9 + $0x158] sm:$0xff]   ;;  %v638_v22 = vrot.slane %v616_v16, %v2696_v6 }
  0x27   : > { %2141 = vmatprep.subr.bf16.mxu1 %v2401_v24  ;;  %v2426_v55 = vld [vmem:[%s2694_s9 + $0x1c8] sm:$0xff]   ;;  %v2430_v59 = vld [vmem:[%s2694_s9 + $0x1d0] sm:$0xff]   ;;  %v2434_v63 = vld [vmem:[%s2694_s9 + $0x1d8] sm:$0xff]   ;;  %v598_v24 = vcombine.high %v582_v19, %v582_v19 }
  0x28   : > { %v2427_v56 = vld [vmem:[%s2694_s9 + $0x108] sm:$0xff]   ;;  %v2431_v60 = vld [vmem:[%s2694_s9 + $0x110] sm:$0xff]   ;;  %v2435_v0 = vld [vmem:[%s2694_s9 + $0x118] sm:$0xff]  }
  0x29   : > { %2120 = vmatpush3.bf16.msra.mxu0 %v2402_v25  ;;  %v2428_v57 = vld [vmem:[%s2694_s9 + $0x188] sm:$0xff]   ;;  %v2432_v61 = vld [vmem:[%s2694_s9 + $0x190] sm:$0xff]   ;;  %v2436_v1 = vld [vmem:[%s2694_s9 + $0x198] sm:$0xff]  }
  0x2a   : > { %2142 = vmatpush3.bf16.msra.mxu1 %v2403_v26  ;;  %2121 = vmatprep.subr.bf16.mxu0 %v2404_v27  ;;  %v2437_v2 = vld [vmem:[%s2694_s9 + $0x160] sm:$0xff]   ;;  %v2441_v8 = vld [vmem:[%s2694_s9 + $0x168] sm:$0xff]   ;;  %v2445_v13 = vld [vmem:[%s2694_s9 + $0x170] sm:$0xff]  }
  0x2b   : > { %2143 = vmatprep.subr.bf16.mxu1 %v2405_v28  ;;  %v2438_v3 = vld [vmem:[%s2694_s9 + $0x1e0] sm:$0xff]   ;;  %v2442_v9 = vld [vmem:[%s2694_s9 + $0x1e8] sm:$0xff]   ;;  %v2446_v14 = vld [vmem:[%s2694_s9 + $0x1f0] sm:$0xff]   ;;  %v648_v28 = vcombine.high %v638_v22, %v638_v22 }
  0x2c   : > { %v2439_v5 = vld [vmem:[%s2694_s9 + $0x120] sm:$0xff]   ;;  %v2443_v10 = vld [vmem:[%s2694_s9 + $0x128] sm:$0xff]   ;;  %v2447_v15 = vld [vmem:[%s2694_s9 + $0x130] sm:$0xff]  }
  0x2d   : > { %2122 = vmatpush3.bf16.msra.mxu0 %v2406_v29  ;;  %v2440_v7 = vld [vmem:[%s2694_s9 + $0x1a0] sm:$0xff]   ;;  %v2444_v12 = vld [vmem:[%s2694_s9 + $0x1a8] sm:$0xff]   ;;  %v2448_v17 = vld [vmem:[%s2694_s9 + $0x1b0] sm:$0xff]  }
  0x2e   : > { %2144 = vmatpush3.bf16.msra.mxu1 %v2407_v31  ;;  %2123 = vmatprep.subr.bf16.mxu0 %v2408_v32  ;;  %v2449_v18 = vld [vmem:[%s2694_s9 + $0x178] sm:$0xff]   ;;  %v2453_v25 = vld [vmem:[%s2694_s9 + $0x240] sm:$0xff]   ;;  %v2457_v30 = vld [vmem:[%s2694_s9 + $0x248] sm:$0xff]  }
  0x2f   : > { %2145 = vmatprep.subr.bf16.mxu1 %v2409_v33  ;;  %v2450_v20 = vld [vmem:[%s2694_s9 + $0x1f8] sm:$0xff]   ;;  %v2454_v26 = vld [vmem:[%s2694_s9 + $0x2c0] sm:$0xff]   ;;  %v2458_v31 = vld [vmem:[%s2694_s9 + $0x2c8] sm:$0xff]  }
  0x30   : > { %v2451_v21 = vld [vmem:[%s2694_s9 + $0x138] sm:$0xff]   ;;  %v2455_v27 = vld [vmem:[%s2694_s9 + $0x200] sm:$0xff]   ;;  %v2459_v32 = vld [vmem:[%s2694_s9 + $0x208] sm:$0xff]  }
  0x31   : > { %2124 = vmatpush3.bf16.msra.mxu0 %v2410_v34  ;;  %v2452_v23 = vld [vmem:[%s2694_s9 + $0x1b8] sm:$0xff]   ;;  %v2456_v29 = vld [vmem:[%s2694_s9 + $0x280] sm:$0xff]   ;;  %v2460_v33 = vld [vmem:[%s2694_s9 + $0x288] sm:$0xff]  }
  0x32   : > { %2146 = vmatpush3.bf16.msra.mxu1 %v2411_v36  ;;  %2125 = vmatprep.subr.bf16.mxu0 %v2412_v37  ;;  %v2461_v34 = vld [vmem:[%s2694_s9 + $0x250] sm:$0xff]   ;;  %v2467_v40 = vld [vmem:[%s2694_s9 + $0x218] sm:$0xff]  }
  0x33   : > { %2147 = vmatprep.subr.bf16.mxu1 %v2413_v38  ;;  %v2462_v35 = vld [vmem:[%s2694_s9 + $0x2d0] sm:$0xff]   ;;  %v2465_v38 = vld [vmem:[%s2694_s9 + $0x258] sm:$0xff]  }
  0x34   : > { %v2463_v36 = vld [vmem:[%s2694_s9 + $0x210] sm:$0xff]   ;;  %v2499_v16 = vld [vmem:[%s2694_s9 + $0x318] sm:$0xff]  }
  0x35   : > { %2126 = vmatpush3.bf16.msra.mxu0 %v2414_v39  ;;  %v2464_v37 = vld [vmem:[%s2694_s9 + $0x290] sm:$0xff]   ;;  %v2466_v39 = vld [vmem:[%s2694_s9 + $0x2d8] sm:$0xff]  }
  0x36   : > { %2148 = vmatpush3.bf16.msra.mxu1 %v2415_v41  ;;  %2127 = vmatprep.subr.bf16.mxu0 %v2416_v42  ;;  %v2468_v41 = vld [vmem:[%s2694_s9 + $0x298] sm:$0xff]   ;;  %v2469_v42 = vld [vmem:[%s2694_s9 + $0x260] sm:$0xff]  }
  0x37   : > { %2149 = vmatprep.subr.bf16.mxu1 %v2417_v44  ;;  %v2471_v44 = vld [vmem:[%s2694_s9 + $0x220] sm:$0xff]  }
  0x39   : > { %2128 = vmatpush3.bf16.msra.mxu0 %v2418_v45  ;;  %v601_v45 = vcombine.high %v2765_v4, %v2765_v4  ;;  %v2488_v4 = vld [vmem:[%s2694_s9 + $0x380] sm:$0xff]  }
  0x3a   : > { %2150 = vmatpush3.bf16.msra.mxu1 %v2419_v47  ;;  %2157 = vmatprep.subr.bf16.mxu0 %v2421_v49  ;;  %v2473_v47 = vld [vmem:[%s2694_s9 + $0x268] sm:$0xff]  }
  0x3b   : > { %2179 = vmatprep.subr.bf16.mxu1 %v2422_v50  ;;  %v2475_v49 = vld [vmem:[%s2694_s9 + $0x228] sm:$0xff]   ;;  %v2816_v50 = vrot.slane %v601_v45, %v2696_v6 }
  0x3c   : > { %1467 = vmatmul.mubr.bf16.vlgmr.msra.gmra.mrb[0].mxu0 %v575_v43  ;;  %v2470_v43 = vld [vmem:[%s2694_s9 + $0x2e0] sm:$0xff]  }
  0x3d   : > { %1507 = vmatmul.mubr.bf16.vlgmr.msra.gmra.mrb[0].mxu1 %v597_v48  ;;  %2158 = vmatpush3.bf16.msra.mxu0 %v2423_v51  ;;  %v2474_v48 = vld [vmem:[%s2694_s9 + $0x2e8] sm:$0xff]  }
  0x3e   : > { %2180 = vmatpush3.bf16.msra.mxu1 %v2424_v53  ;;  %1546 = vmatprep.mubr.bf16.mxu0 %v596_v46  ;;  %v2472_v46 = vld [vmem:[%s2694_s9 + $0x2a0] sm:$0xff]   ;;  %v2476_v51 = vld [vmem:[%s2694_s9 + $0x2a8] sm:$0xff]   ;;  %v2478_v53 = vld [vmem:[%s2694_s9 + $0x2f0] sm:$0xff]  }
  0x3f   : > { %2159 = vmatprep.subr.bf16.mxu0 %v2425_v54  ;;  %1586 = vmatprep.mubr.bf16.mxu1 %v600_v52  ;;  %v2477_v52 = vld [vmem:[%s2694_s9 + $0x270] sm:$0xff]  }
  0x40   : > { %2181 = vmatprep.subr.bf16.mxu1 %v2426_v55  ;;  %v2479_v54 = vld [vmem:[%s2694_s9 + $0x230] sm:$0xff]   ;;  %v617_v55 = vcombine.high %v2816_v50, %v2816_v50 }
  0x41   : > { %2160 = vmatpush3.bf16.msra.mxu0 %v2427_v56  ;;  %v2480_v56 = vld [vmem:[%s2694_s9 + $0x2b0] sm:$0xff]  }
  0x42   : > { %2182 = vmatpush3.bf16.msra.mxu1 %v2428_v57  ;;  %2161 = vmatprep.subr.bf16.mxu0 %v2429_v58  ;;  %v2481_v57 = vld [vmem:[%s2694_s9 + $0x278] sm:$0xff]   ;;  %v624_v58 = vrot.slane %v2774_v11, %v2696_v6  ;;  %v2494_v11 = vld [vmem:[%s2694_s9 + $0x3d0] sm:$0xff]  }
  0x43   : > { %2183 = vmatprep.subr.bf16.mxu1 %v2430_v59  ;;  %v2482_v59 = vld [vmem:[%s2694_s9 + $0x2f8] sm:$0xff]  }
  0x45   : > { %2162 = vmatpush3.bf16.msra.mxu0 %v2431_v60  ;;  %v2483_v60 = vld [vmem:[%s2694_s9 + $0x238] sm:$0xff]  }
  0x46   : > { %2184 = vmatpush3.bf16.msra.mxu1 %v2432_v61  ;;  %2163 = vmatprep.subr.bf16.mxu0 %v2433_v62  ;;  %v645_v61 = vrot.slane %v617_v55, %v2696_v6  ;;  %v2484_v62 = vld [vmem:[%s2694_s9 + $0x2b8] sm:$0xff]  }
  0x47   : > { %2185 = vmatprep.subr.bf16.mxu1 %v2434_v63  ;;  %v646_v63 = vcombine.high %v624_v58, %v624_v58 }
  0x49   : > { %2164 = vmatpush3.bf16.msra.mxu0 %v2435_v0  ;;  %v2485_v0 = vld [vmem:[%s2694_s9 + $0x340] sm:$0xff]  }
  0x4a   : > { %2186 = vmatpush3.bf16.msra.mxu1 %v2436_v1  ;;  %2165 = vmatprep.subr.bf16.mxu0 %v2437_v2  ;;  %v2486_v1 = vld [vmem:[%s2694_s9 + $0x3c0] sm:$0xff]  }
  0x4b   : > { %2187 = vmatprep.subr.bf16.mxu1 %v2438_v3  ;;  %v2487_v2 = vld [vmem:[%s2694_s9 + $0x300] sm:$0xff]   ;;  %v649_v3 = vcombine.high %v645_v61, %v645_v61 }
  0x4d   : > { %2166 = vmatpush3.bf16.msra.mxu0 %v2439_v5  ;;  %v2489_v5 = vld [vmem:[%s2694_s9 + $0x348] sm:$0xff]  }
  0x4e   : > { %2188 = vmatpush3.bf16.msra.mxu1 %v2440_v7  ;;  %2167 = vmatprep.subr.bf16.mxu0 %v2441_v8  ;;  %v2490_v7 = vld [vmem:[%s2694_s9 + $0x3c8] sm:$0xff]  }
  0x4f   : > { %2189 = vmatprep.subr.bf16.mxu1 %v2442_v9  ;;  %v2491_v8 = vld [vmem:[%s2694_s9 + $0x308] sm:$0xff]  }
  0x50   : > { %v2492_v9 = vld [vmem:[%s2694_s9 + $0x388] sm:$0xff]  }
  0x51   : > { %2168 = vmatpush3.bf16.msra.mxu0 %v2443_v10  ;;  %v2493_v10 = vld [vmem:[%s2694_s9 + $0x350] sm:$0xff]  }
  0x52   : > { %2190 = vmatpush3.bf16.msra.mxu1 %v2444_v12  ;;  %2169 = vmatprep.subr.bf16.mxu0 %v2445_v13  ;;  %v2495_v12 = vld [vmem:[%s2694_s9 + $0x310] sm:$0xff]  }
  0x53   : > { %2191 = vmatprep.subr.bf16.mxu1 %v2446_v14  ;;  %v2496_v13 = vld [vmem:[%s2694_s9 + $0x390] sm:$0xff]   ;;  %v2497_v14 = vld [vmem:[%s2694_s9 + $0x358] sm:$0xff]  }
  0x55   : > { %2170 = vmatpush3.bf16.msra.mxu0 %v2447_v15  ;;  %v2498_v15 = vld [vmem:[%s2694_s9 + $0x3d8] sm:$0xff]  }
  0x56   : > { %2192 = vmatpush3.bf16.msra.mxu1 %v2448_v17  ;;  %2171 = vmatprep.subr.bf16.mxu0 %v2449_v18  ;;  %v2500_v17 = vld [vmem:[%s2694_s9 + $0x398] sm:$0xff]   ;;  %v2501_v18 = vld [vmem:[%s2694_s9 + $0x360] sm:$0xff]  }
  0x57   : > { %2193 = vmatprep.subr.bf16.mxu1 %v2450_v20  ;;  %v2503_v20 = vld [vmem:[%s2694_s9 + $0x320] sm:$0xff]  }
  0x59   : > { %2172 = vmatpush3.bf16.msra.mxu0 %v2451_v21  ;;  %v2504_v21 = vld [vmem:[%s2694_s9 + $0x3a0] sm:$0xff]  }
  0x5a   : > { %2194 = vmatpush3.bf16.msra.mxu1 %v2452_v23  ;;  %2201 = vmatprep.subr.bf16.mxu0 %v2453_v25  ;;  %v2506_v23 = vld [vmem:[%s2694_s9 + $0x3e8] sm:$0xff]  }
  0x5b   : > { %2223 = vmatprep.subr.bf16.mxu1 %v2454_v26  ;;  %v2508_v25 = vld [vmem:[%s2694_s9 + $0x3a8] sm:$0xff]   ;;  %v2509_v26 = vld [vmem:[%s2694_s9 + $0x370] sm:$0xff]  }
  0x5c   : > { %1547 = vmatmul.mubr.bf16.vlgmr.msra.gmra.mrb[4].mxu0 %v582_v19  ;;  %v2502_v19 = vld [vmem:[%s2694_s9 + $0x3e0] sm:$0xff]  }
  0x5d   : > { %1587 = vmatmul.mubr.bf16.vlgmr.msra.gmra.mrb[4].mxu1 %v598_v24  ;;  %2202 = vmatpush3.bf16.msra.mxu0 %v2455_v27  ;;  %v2507_v24 = vld [vmem:[%s2694_s9 + $0x328] sm:$0xff]   ;;  %v2510_v27 = vld [vmem:[%s2694_s9 + $0x3f0] sm:$0xff]  }
  0x5e   : > { %2224 = vmatpush3.bf16.msra.mxu1 %v2456_v29  ;;  %1626 = vmatprep.mubr.bf16.mxu0 %v638_v22  ;;  %v2505_v22 = vld [vmem:[%s2694_s9 + $0x368] sm:$0xff]   ;;  %v2512_v29 = vld [vmem:[%s2694_s9 + $0x3b0] sm:$0xff]  }
  0x5f   : > { %2203 = vmatprep.subr.bf16.mxu0 %v2457_v30  ;;  %1666 = vmatprep.mubr.bf16.mxu1 %v648_v28  ;;  %v2511_v28 = vld [vmem:[%s2694_s9 + $0x330] sm:$0xff]   ;;  %v2513_v30 = vld [vmem:[%s2694_s9 + $0x378] sm:$0xff]  }
  0x60   : > { %2225 = vmatprep.subr.bf16.mxu1 %v2458_v31  ;;  %v631_v31 = vrot.slane %v2816_v50, %v2696_v6  ;;  %v1762_v6 = vld [vmem:[%s276_s26] sm:$0xff] }
  0x61   : > { %2204 = vmatpush3.bf16.msra.mxu0 %v2459_v32  ;;  %v2514_v32 = vld [vmem:[%s2694_s9 + $0x3f8] sm:$0xff]  }
  0x62   : > { %2226 = vmatpush3.bf16.msra.mxu1 %v2460_v33  ;;  %2205 = vmatprep.subr.bf16.mxu0 %v2461_v34  ;;  %v2515_v33 = vld [vmem:[%s2694_s9 + $0x338] sm:$0xff]  }
  0x63   : > { %2227 = vmatprep.subr.bf16.mxu1 %v2462_v35  ;;  %v2516_v34 = vld [vmem:[%s2694_s9 + $0x3b8] sm:$0xff]   ;;  %v647_v35 = vcombine.high %v631_v31, %v631_v31 }
  0x65   : > { %2206 = vmatpush3.bf16.msra.mxu0 %v2463_v36  ;;  %v1977_v36 = vld [vmem:[%s271_s14] ss:$0 sm:$0xff]  ;;  %s2524_s14 = scalar_lea.vmem %s2523_s13, 64 }
  0x66   : > { %2228 = vmatpush3.bf16.msra.mxu1 %v2464_v37  ;;  %2207 = vmatprep.subr.bf16.mxu0 %v2465_v38  ;;  %290 = vst.msk [vmem:[#allocation2] sm:$0x3] %vm289_vm0, %v1977_v36  ;;  %v1763_v37 = vld [vmem:[%s276_s26 + $0x8] sm:$0xff]  ;;  %p2526_p2 = scmp.lt.s32.totalorder %s2524_s14, %s2518_s12 }
  0x67   : > { %2229 = vmatprep.subr.bf16.mxu1 %v2466_v39  ;;  %v2318_v38 = vpack.c.bf16 %v1763_v37, %v1762_v6  ;;  %v2599_v39 = vmov 0.0|0.0  }
  0x68   : > { %p2527_p3 = por %p2526_p2, %p2525_p1 }
  0x69   : > { %2208 = vmatpush3.bf16.msra.mxu0 %v2467_v40  ;;  %v1764_v40 = vld [vmem:[%s276_s26 + $0x10] sm:$0xff] }
  0x6a   : > { %2230 = vmatpush3.bf16.msra.mxu1 %v2468_v41  ;;  %2209 = vmatprep.subr.bf16.mxu0 %v2469_v42  ;;  %v1765_v41 = vld [vmem:[%s276_s26 + $0x18] sm:$0xff]  ;;  %p2528_p5 = pnand %p2527_p3, %p2521_p0 }
  0x6b   : > { %2231 = vmatprep.subr.bf16.mxu1 %v2470_v43  ;;  %v2321_v42 = vpack.c.bf16 %v1765_v41, %v1764_v40  ;;  %v1766_v43 = vld [vmem:[%s276_s26 + $0x20] sm:$0xff] }
  0x6d   : > { %2210 = vmatpush3.bf16.msra.mxu0 %v2471_v44  ;;  %v1767_v44 = vld [vmem:[%s276_s26 + $0x28] sm:$0xff] }
  0x6e   : > { %2232 = vmatpush3.bf16.msra.mxu1 %v2472_v46  ;;  %2211 = vmatprep.subr.bf16.mxu0 %v2473_v47  ;;  %v2324_v45 = vpack.c.bf16 %v1767_v44, %v1766_v43  ;;  %v1768_v46 = vld [vmem:[%s276_s26 + $0x30] sm:$0xff]  ;;  %v1769_v47 = vld [vmem:[%s276_s26 + $0x38] sm:$0xff] }
  0x6f   : > { %2233 = vmatprep.subr.bf16.mxu1 %v2474_v48  ;;  %v2601_v48 = vmov 0.0  }
  0x71   : > { %2212 = vmatpush3.bf16.msra.mxu0 %v2475_v49  ;;  %v2327_v49 = vpack.c.bf16 %v1769_v47, %v1768_v46 }
  0x72   : > { %2234 = vmatpush3.bf16.msra.mxu1 %v2476_v51  ;;  %2213 = vmatprep.subr.bf16.mxu0 %v2477_v52 }
  0x73   : > { %2235 = vmatprep.subr.bf16.mxu1 %v2478_v53 }
  0x75   : > { %2214 = vmatpush3.bf16.msra.mxu0 %v2479_v54 }
  0x76   : > { %2236 = vmatpush3.bf16.msra.mxu1 %v2480_v56  ;;  %2215 = vmatprep.subr.bf16.mxu0 %v2481_v57 }
  0x77   : > { %2237 = vmatprep.subr.bf16.mxu1 %v2482_v59 }
  0x79   : > { %2216 = vmatpush3.bf16.msra.mxu0 %v2483_v60 }
  0x7a   : > { %2238 = vmatpush3.bf16.msra.mxu1 %v2484_v62  ;;  %2245 = vmatprep.subr.bf16.mxu0 %v2485_v0 }
  0x7b   : > { %2267 = vmatprep.subr.bf16.mxu1 %v2486_v1 }
  0x7c   : > { %1627 = vmatmul.mubr.bf16.vlgmr.msra.gmra.mrb[8].mxu0 %v624_v58 }
  0x7d   : > { %1667 = vmatmul.mubr.bf16.vlgmr.msra.gmra.mrb[8].mxu1 %v646_v63  ;;  %2246 = vmatpush3.bf16.msra.mxu0 %v2487_v2 }
  0x7e   : > { %2268 = vmatpush3.bf16.msra.mxu1 %v2488_v4  ;;  %1706 = vmatprep.mubr.bf16.mxu0 %v645_v61 }
  0x7f   : > { %2247 = vmatprep.subr.bf16.mxu0 %v2489_v5  ;;  %1746 = vmatprep.mubr.bf16.mxu1 %v649_v3 }
  0x80   : > { %2269 = vmatprep.subr.bf16.mxu1 %v2490_v7 }
  0x81   : > { %2248 = vmatpush3.bf16.msra.mxu0 %v2491_v8 }
  0x82   : > { %2270 = vmatpush3.bf16.msra.mxu1 %v2492_v9  ;;  %2249 = vmatprep.subr.bf16.mxu0 %v2493_v10 }
  0x83   : > { %2271 = vmatprep.subr.bf16.mxu1 %v2494_v11 }
  0x85   : > { %2250 = vmatpush3.bf16.msra.mxu0 %v2495_v12 }
  0x86   : > { %2272 = vmatpush3.bf16.msra.mxu1 %v2496_v13  ;;  %2251 = vmatprep.subr.bf16.mxu0 %v2497_v14 }
  0x87   : > { %2273 = vmatprep.subr.bf16.mxu1 %v2498_v15 }
  0x89   : > { %2252 = vmatpush3.bf16.msra.mxu0 %v2499_v16 }
  0x8a   : > { %2274 = vmatpush3.bf16.msra.mxu1 %v2500_v17  ;;  %2253 = vmatprep.subr.bf16.mxu0 %v2501_v18 }
  0x8b   : > { %2275 = vmatprep.subr.bf16.mxu1 %v2502_v19 }
  0x8d   : > { %2254 = vmatpush3.bf16.msra.mxu0 %v2503_v20 }
  0x8e   : > { %2276 = vmatpush3.bf16.msra.mxu1 %v2504_v21  ;;  %2255 = vmatprep.subr.bf16.mxu0 %v2505_v22 }
  0x8f   : > { %2277 = vmatprep.subr.bf16.mxu1 %v2506_v23 }
  0x91   : > { %2256 = vmatpush3.bf16.msra.mxu0 %v2507_v24 }
  0x92   : > { %2278 = vmatpush3.bf16.msra.mxu1 %v2508_v25  ;;  %2257 = vmatprep.subr.bf16.mxu0 %v2509_v26 }
  0x93   : > { %2279 = vmatprep.subr.bf16.mxu1 %v2510_v27 }
  0x95   : > { %2258 = vmatpush3.bf16.msra.mxu0 %v2511_v28 }
  0x96   : > { %2280 = vmatpush3.bf16.msra.mxu1 %v2512_v29  ;;  %2259 = vmatprep.subr.bf16.mxu0 %v2513_v30 }
  0x97   : > { %2281 = vmatprep.subr.bf16.mxu1 %v2514_v32 }
  0x99   : > { %2260 = vmatpush3.bf16.msra.mxu0 %v2515_v33  ;;  %v291_v33 = vld [vmem:[#allocation2] sm:$0x3] }
  0x9a   : > { %2282 = vmatpush3.bf16.msra.mxu1 %v2516_v34  ;;  %2317 = vmatprep.subr.bf16.mxu0 %v2599_v39 }
  0x9c   : > { %1707 = vmatmul.mubr.bf16.vlgmr.msra.gmra.mrb[12].mxu0 %v631_v31 }
  0x9d   : > { %1747 = vmatmul.mubr.bf16.vlgmr.msra.gmra.mrb[12].mxu1 %v647_v35  ;;  %2319 = vmatpush3.bf16.msra.mxu0 %v2318_v38 }
  0x9e   : > { %2320 = vmatprep.subr.bf16.mxu0 %v2599_v39  ;;  %2314 = vmatprep.mubr.msk.f32.mxu0 %vm2600_vm1, %v2601_v48 }
  0xa1   : > { %2322 = vmatpush3.bf16.msra.mxu0 %v2321_v42 }
  0xa2   : > { %2323 = vmatprep.subr.bf16.mxu0 %v2599_v39 }
  0xa5   : > { %2325 = vmatpush3.bf16.msra.mxu0 %v2324_v45 }
  0xa6   : > { %2326 = vmatprep.subr.bf16.mxu0 %v2599_v39 }
  0xa9   : > { %2328 = vmatpush3.bf16.msra.mxu0 %v2327_v49 }
 0x10f   : > { %v2129_v50 = vpop.f32.mrb[0].mxu0 }
 0x110   : > { %v2151_v51 = vpop.f32.mrb[0].mxu1  ;;  %v2130_v52 = vpop.f32.mrb[1].mxu0 }
 0x111   : > { %v2131_v53 = vadd.f32 %v2130_v52, %v2129_v50  ;;  %v2152_v54 = vpop.f32.mrb[1].mxu1  ;;  %v2132_v55 = vpop.f32.mrb[2].mxu0 }
 0x112   : > { %v2153_v56 = vadd.f32 %v2152_v54, %v2151_v51  ;;  %v2154_v57 = vpop.f32.mrb[2].mxu1  ;;  %v2133_v58 = vpop.f32.mrb[3].mxu0 }
 0x113   : > { %v2155_v59 = vpop.f32.mrb[3].mxu1 }
 0x114   : > { %v1509_v60 = vadd.f32 %v2153_v56, %v2131_v53 }
 0x12f   : > { %v2173_v61 = vpop.f32.mrb[4].mxu0 }
 0x130   : > { %v2195_v62 = vpop.f32.mrb[4].mxu1  ;;  %v2174_v63 = vpop.f32.mrb[5].mxu0 }
 0x131   : > { %v2175_v0 = vadd.f32 %v2174_v63, %v2173_v61  ;;  %v2196_v1 = vpop.f32.mrb[5].mxu1  ;;  %v2176_v2 = vpop.f32.mrb[6].mxu0 }
 0x132   : > { %v2197_v3 = vadd.f32 %v2196_v1, %v2195_v62  ;;  %v2198_v4 = vpop.f32.mrb[6].mxu1  ;;  %v2177_v5 = vpop.f32.mrb[7].mxu0 }
 0x133   : > { %v1549_v7 = vadd.f32 %v2175_v0, %v1509_v60  ;;  %v2199_v8 = vpop.f32.mrb[7].mxu1 }
 0x135   : > { %v1589_v9 = vadd.f32 %v2197_v3, %v1549_v7 }
 0x14f   : > { %v2217_v10 = vpop.f32.mrb[8].mxu0 }
 0x150   : > { %v2239_v11 = vpop.f32.mrb[8].mxu1  ;;  %v2218_v12 = vpop.f32.mrb[9].mxu0 }
 0x151   : > { %v2219_v13 = vadd.f32 %v2218_v12, %v2217_v10  ;;  %v2240_v14 = vpop.f32.mrb[9].mxu1  ;;  %v2220_v15 = vpop.f32.mrb[10].mxu0 }
 0x152   : > { %v2241_v16 = vadd.f32 %v2240_v14, %v2239_v11  ;;  %v2242_v17 = vpop.f32.mrb[10].mxu1  ;;  %v2221_v18 = vpop.f32.mrb[11].mxu0 }
 0x153   : > { %v1629_v19 = vadd.f32 %v2219_v13, %v1589_v9  ;;  %v2243_v20 = vpop.f32.mrb[11].mxu1 }
 0x155   : > { %v1669_v21 = vadd.f32 %v2241_v16, %v1629_v19 }
 0x16f   : > { %v2261_v22 = vpop.f32.mrb[12].mxu0 }
 0x170   : > { %v2283_v23 = vpop.f32.mrb[12].mxu1  ;;  %v2262_v24 = vpop.f32.mrb[13].mxu0 }
 0x171   : > { %v2263_v25 = vadd.f32 %v2262_v24, %v2261_v22  ;;  %v2284_v26 = vpop.f32.mrb[13].mxu1  ;;  %v2264_v27 = vpop.f32.mrb[14].mxu0 }
 0x172   : > { %v2285_v28 = vadd.f32 %v2284_v26, %v2283_v23  ;;  %v2286_v29 = vpop.f32.mrb[14].mxu1  ;;  %v2265_v30 = vpop.f32.mrb[15].mxu0 }
 0x173   : > { %v1709_v31 = vadd.f32 %v2263_v25, %v1669_v21  ;;  %v2287_v32 = vpop.f32.mrb[15].mxu1 }
 0x175   : > { %v1749_v34 = vadd.f32 %v2285_v28, %v1709_v31 }
 0x177   : > { %v1754_v35 = vadd.f32 %v1749_v34, %v291_v33 }
 0x179   : > { %1756 = vst.msk [vmem:[#allocation2] sm:$0x3] %vm289_vm0, %v1754_v35 }
 0x180   : > { %v1760_v36 = vld [vmem:[#allocation2] sm:$0x3] }
 0x181   : > { %v1761_v6 = vmax.f32 %v1760_v36, 0.0 }
 0x183   : > { %2315 = vmatmul.mubr.msk.f32.vlgmr.msra.gmra.mrb[16].mxu0 %vm1770_vm2, %v1761_v6 }
 0x256   : > { %v1840_v37 = vpop.f32.mrb[16].mxu0 }
 0x257   : > { %1845 = vst.msk [vmem:[%s253_s6] sm:$0x3] %vm1844_vm3, %v1840_v37  ;;  %v2316_v38 = vpop.f32.mrb[17].mxu0 }
 0x258   : > { %2531 = shalt.err (!%p2528_p5)
}
 0x259   : > { %s2532_s21 = scalar_lea.hbm %s2881_s10, 32  ;;  %s2536_s26 = scalar_lea.hbm %s2932_s4, 64 }
 0x25a   : > { %p2533_p6 = scmp.ne.s32.totalorder %s2881_s10, %s2532_s21  ;;  %p2537_p10 = scmp.lt.u32.totalorder %s2881_s10, %s2932_s4 }
 0x25b   : > { %p2538_p11 = scmp.lt.u32.totalorder %s2536_s26, %s2532_s21  ;;  %p2540_p13 = scmp.lt.u32.totalorder %s2532_s21, %s2881_s10 }
 0x25c   : > { %p2534_p7 = pnand %p2533_p6, %p2668_p4 }
 0x25d   : > { %p2539_p12 = por %p2538_p11, %p2537_p10 }
 0x25e   : > { %p2535_p9 = pneg %p2534_p7 }
 0x25f   : > { %p2541_p0 = por %p2540_p13, %p2539_p12 }
 0x261   : > { %p2542_p1 = pnand %p2541_p0, %p2535_p9 }
 0x263   : > { %2545 = shalt.err (!%p2542_p1)
}
 0x264   : > { %2329 = dma.vmem_to_hbm [thread:$0]  (%p2668_p4), %s2883_s7, 32, %s2881_s10, %s1847_s11  }
 0x265 PF: > { %p2335_p2 = scmp.ge.s32.totalorder %s2596_s20, 2  ;;  %s1872_s5 = sand.u32 1, %s2576_s15  }
 0x266   : > { %s1873_s6 = scalar_lea.sflag [#allocation4], %s1872_s5 }
 0x267   : > { %p2332_p3 = pnand %p2335_p2, %p2675_p8 }
 0x269   : > { %2571 = dma.done.wait (!%p2332_p3), %s1873_s6, 32  }
 0x26a   : > { %2573 = vsyncadd (!%p2332_p3), %s1873_s6, 4294967264  ;;  %s17_s20 = sadd.s32 1, %s2596_s20   ;;  %s2935_s15 = smov %s2580_s16 }
 0x26b   : > { %p14_p5 = scmp.ge.s32.totalorder %s17_s20, 4   ;;  %s2936_s16 = smov %s2584_s17 }
 0x26c   : > { %s2937_s17 = smov %s2681_s28  ;;  %s2938_s18 = smov %s2592_s19 }
 0x26d   : > { %s2939_s19 = smov %s2941_s23  ;;  %16 = sbr.rel (!%p14_p5) target bundleno = 4 (0x4), region = 88 }
 0x274   :  { %1878 = vsyncpa [#allocation4], 1 }
 0x275   :  { %1880 = vsyncpa [#allocation4 + $0x1], 1 }

</bundles_post_ra>
